<compile_context>
chip_gen: v7x
topology: tpu7x:2x2x1
jax: 0.10.0
libtpu: 0.0.40
codegen_flags: <defaults>
</compile_context>

<pallas_src>
import functools

import jax
import jax.numpy as jnp
from jax.experimental import pallas as pl
from jax.experimental.pallas import tpu as pltpu

ROWS = 32            # trailing (32, 64) feature tile of the module
FEAT = 64            # columns 48:64 carry the (32, 16) weight
WEIGHT_VALUE = 10.0  # torch.full((32, 16), 10)

LANES = 128


def _sq_diff_sum_kernel(p_ref, t_ref, out_ref, *, chunk_groups):
    """Accumulate sum((p - t)^2) over the group axis into a resident (sub, 128)
    f32 output block.

    p_ref / t_ref: (g_blk, sub, 128) streamed input blocks.
    out_ref:       (sub, 128) f32, resident across the inner grid axis.

    The block is consumed in `chunk_groups`-group chunks inside a fori_loop so
    the difference / square temporaries stay in vregs instead of becoming
    multi-MiB VMEM temporaries (which would make the single vst slot the
    bottleneck).
    """
    i = pl.program_id(1)

    @pl.when(i == 0)
    def _init():
        out_ref[...] = jnp.zeros_like(out_ref)

    g_blk = p_ref.shape[0]
    n_full = g_blk // chunk_groups
    rem = g_blk - n_full * chunk_groups

    def chunk_sum(start, size):
        d = (p_ref[pl.ds(start, size)].astype(jnp.float32)
             - t_ref[pl.ds(start, size)].astype(jnp.float32))
        return jnp.sum(d * d, axis=0)

    if n_full > 0:
        def body(j, acc):
            start = pl.multiple_of(j * chunk_groups, chunk_groups)
            return acc + chunk_sum(start, chunk_groups)

        acc = jax.lax.fori_loop(0, n_full, body,
                                jnp.zeros(out_ref.shape, jnp.float32),
                                unroll=min(n_full, 8))
        out_ref[...] += acc

    if rem > 0:  # static remainder when g_blk is not a multiple of chunk_groups
        out_ref[...] += chunk_sum(n_full * chunk_groups, rem)


def _chip_config():
    """(target bytes per input block per grid step, number of parallel partials)."""
    kind = ""
    try:
        kind = jax.devices()[0].device_kind.lower()
    except Exception:
        pass
    if "v7" in kind or "7x" in kind:
        return 4 << 20, 2   # 2 TCs; 2 inputs x 2 bufs x 4 MiB = 16 MiB < 32 MiB scoped
    if "v6" in kind:
        return 4 << 20, 1   # 16 MiB double-buffered < 32 MiB scoped-VMEM default
    return 2 << 20, 1       # v5e / unknown: 8 MiB double-buffered < 16 MiB scoped


def weighted_mse_dit(pred, targ, weight_value=WEIGHT_VALUE,
                     block_bytes=None, num_partials=None):
    """Pallas implementation of Weighted_MSE_dit.forward. Returns an f32 scalar."""
    B, T, R, C = pred.shape
    assert (R, C) == (ROWS, FEAT), "module hard-codes a (32,16) weight on cols 48:64"
    assert targ.shape == pred.shape
    n = B * T * R * C
    itemsize = jnp.dtype(pred.dtype).itemsize

    cfg_bytes, cfg_partials = _chip_config()
    block_bytes = cfg_bytes if block_bytes is None else block_bytes
    num_partials = cfg_partials if num_partials is None else num_partials

    # Lane-dense slab layout: (groups, sub, 128); 16 sublanes per group for
    # 16-bit dtypes so packed vregs are full, 8 otherwise.
    sub = 16 if itemsize == 2 else 8
    groups = n // (sub * LANES)               # n = B*T*2048 -> always divisible
    bytes_per_group = sub * LANES * itemsize  # 4096 B for both f32 and bf16

    np_eff = num_partials if groups >= num_partials else 1
    g_target = max(1, block_bytes // bytes_per_group)
    bpp = max(1, pl.cdiv(groups, np_eff * g_target))   # blocks per partial
    g_blk = groups // (np_eff * bpp)                   # groups per block (exact fit)
    main_groups = np_eff * bpp * g_blk                 # covered with zero padding
    tail_groups = groups - main_groups                 # < np_eff*bpp, usually 0

    p3 = pred.reshape(groups, sub, LANES)   # contiguous reshape: no HBM copy
    t3 = targ.reshape(groups, sub, LANES)

    chunk_groups = max(1, 64 // sub)        # 8 f32-vregs per chunk per tensor

    # Bump to pipeline_mode=pl.Buffered(3) on v7x if profiling ever shows
    # exposed DMA at step boundaries; default double-buffering suffices here.
    main_spec = pl.BlockSpec((g_blk, sub, LANES),
                             lambda c, i, _bpp=bpp: (c * _bpp + i, 0, 0))

    partials = pl.pallas_call(
        functools.partial(_sq_diff_sum_kernel, chunk_groups=chunk_groups),
        out_shape=jax.ShapeDtypeStruct((np_eff, sub, LANES), jnp.float32),
        grid_spec=pltpu.PrefetchScalarGridSpec(
            num_scalar_prefetch=0,
            grid=(np_eff, bpp),
            in_specs=[main_spec, main_spec],
            out_specs=pl.BlockSpec((None, sub, LANES), lambda c, i: (c, 0, 0)),
        ),
        compiler_params=pltpu.CompilerParams(
            dimension_semantics=("parallel", "arbitrary")),
        cost_estimate=pl.CostEstimate(
            flops=3 * n, transcendentals=0, bytes_accessed=2 * n * itemsize),
    )(p3, t3)

    total = jnp.sum(partials)

    # Ragged tail (only when groups doesn't split into equal blocks; always
    # smaller than one streamed block): one tiny fused XLA reduce instead of
    # padding/copying the whole inputs in HBM.
    if tail_groups > 0:
        off = main_groups * sub * LANES
        dt = (pred.reshape(-1)[off:].astype(jnp.float32)
              - targ.reshape(-1)[off:].astype(jnp.float32))
        total = total + jnp.sum(dt * dt)

    # Edge-timestep weighting, applied algebraically: the kernel accumulated the
    # plain sum everywhere, so add (W - 1) * sum(sq) over the tiny 48: slices at
    # t = 0 and t = T-1.  When T == 1 both slices alias and PyTorch multiplies
    # the same slice twice, giving an overall coefficient of (W^2 - 1).
    d0 = (pred[:, 0, :, 48:].astype(jnp.float32)
          - targ[:, 0, :, 48:].astype(jnp.float32))
    d1 = (pred[:, T - 1, :, 48:].astype(jnp.float32)
          - targ[:, T - 1, :, 48:].astype(jnp.float32))
    edge = jnp.sum(d0 * d0) + jnp.sum(d1 * d1)
    w = float(weight_value)
    coef = (w - 1.0) if T > 1 else (w * w - 1.0) / 2.0
    return total + coef * edge


def _reference(pred, targ, weight_value=WEIGHT_VALUE):
    sq = (pred.astype(jnp.float32) - targ.astype(jnp.float32)) ** 2
    sq = sq.at[:, 0, :, 48:].multiply(weight_value)
    sq = sq.at[:, -1, :, 48:].multiply(weight_value)
    return sq.sum()


if __name__ == "__main__":
    key = jax.random.PRNGKey(0)
    k1, k2 = jax.random.split(key)

    B, T = 2, 4  # small batch / horizon; feature dims fixed by the module (32, 64)
    pred = jax.random.normal(k1, (B, T, ROWS, FEAT), dtype=jnp.float32)
    targ = jax.random.normal(k2, (B, T, ROWS, FEAT), dtype=jnp.float32)

    loss = jax.block_until_ready(jax.jit(weighted_mse_dit)(pred, targ))
    ref = _reference(pred, targ)
    assert jnp.allclose(loss, ref, rtol=1e-5, atol=1e-2), (loss, ref)

    # T == 1 edge case: both weighted slices alias -> factor 100, like PyTorch.
    p1, t1 = pred[:, :1], targ[:, :1]
    loss1 = jax.block_until_ready(weighted_mse_dit(p1, t1))
    assert jnp.allclose(loss1, _reference(p1, t1), rtol=1e-5, atol=1e-2), (loss1,)

    # bf16 path: exercises the 16-sublane native packing of the slab.
    pb, tb = pred.astype(jnp.bfloat16), targ.astype(jnp.bfloat16)
    loss_b = jax.block_until_ready(weighted_mse_dit(pb, tb))
    ref_b = _reference(pb, tb)
    assert jnp.allclose(loss_b, ref_b, rtol=1e-4, atol=1e-1), (loss_b, ref_b)

    print("KERNEL_OK")
</pallas_src>

<mosaic_0001>
module attributes {stable_mosaic.version = 11 : i64} {
  func.func @_sq_diff_sum_kernel(%arg0: i32, %arg1: i32, %arg2: memref<16x8x128xf32, #tpu.memory_space<vmem>>, %arg3: memref<16x8x128xf32, #tpu.memory_space<vmem>>, %arg4: memref<1x8x128xf32, #tpu.memory_space<vmem>>) attributes {dimension_semantics = [#tpu.dimension_semantics<parallel>, #tpu.dimension_semantics<arbitrary>], iteration_bounds = array<i64: 1, 1>, scalar_prefetch = 0 : i64, scratch_operands = 0 : i64, tpu.core_type = #tpu.core_type<tc>, window_params = [{transform_indices = @transform_0, window_bounds = array<i64: 16, 8, 128>}, {transform_indices = @transform_1, window_bounds = array<i64: 16, 8, 128>}, {transform_indices = @transform_2, window_bounds = array<i64: 1, 8, 128>}]} {
    %c0_i32 = arith.constant 0 : i32
    %0 = arith.cmpi eq, %arg1, %c0_i32 : i32
    %1 = arith.extui %0 : i1 to i32
    %c0_i32_0 = arith.constant 0 : i32
    %2 = arith.cmpi ne, %1, %c0_i32_0 : i32
    scf.if %2 {
      %cst_18 = arith.constant 0.000000e+00 : f32
      %30 = vector.broadcast %cst_18 : f32 to vector<8x128xf32>
      %c0_19 = arith.constant 0 : index
      %c0_20 = arith.constant 0 : index
      %c0_21 = arith.constant 0 : index
      %31 = vector.load %arg4[%c0_19, %c0_20, %c0_21] : memref<1x8x128xf32, #tpu.memory_space<vmem>>, vector<1x8x128xf32>
      %32 = vector.shape_cast %31 : vector<1x8x128xf32> to vector<8x128xf32>
      %33 = vector.shape_cast %30 : vector<8x128xf32> to vector<1x8x128xf32>
      tpu.vector_store %arg4[%c0_19, %c0_20, %c0_21], %33 {strides = array<i32>} : memref<1x8x128xf32, #tpu.memory_space<vmem>>, vector<1x8x128xf32>,
    } else {
    }
    %cst = arith.constant 0.000000e+00 : f32
    %3 = vector.broadcast %cst : f32 to vector<8x128xf32>
    %c0_i32_1 = arith.constant 0 : i32
    %c8_i32 = arith.constant 8 : i32
    %4 = arith.muli %c0_i32_1, %c8_i32 : i32
    %5 = tpu.assume_multiple %4, 8 : i32
    %6 = arith.index_cast %5 : i32 to index
    %c0 = arith.constant 0 : index
    %c0_2 = arith.constant 0 : index
    %7 = vector.load %arg2[%6, %c0, %c0_2] : memref<16x8x128xf32, #tpu.memory_space<vmem>>, vector<8x8x128xf32>
    %8 = arith.index_cast %5 : i32 to index
    %c0_3 = arith.constant 0 : index
    %c0_4 = arith.constant 0 : index
    %9 = vector.load %arg3[%8, %c0_3, %c0_4] : memref<16x8x128xf32, #tpu.memory_space<vmem>>, vector<8x8x128xf32>
    %10 = arith.subf %7, %9 : vector<8x8x128xf32>
    %11 = arith.mulf %10, %10 : vector<8x8x128xf32>
    %cst_5 = arith.constant dense<0.000000e+00> : vector<8x128xf32>
    %12 = vector.multi_reduction <add>, %11, %cst_5 [0] : vector<8x8x128xf32> to vector<8x128xf32>
    %13 = arith.addf %3, %12 : vector<8x128xf32>
    %c1_i32 = arith.constant 1 : i32
    %c8_i32_6 = arith.constant 8 : i32
    %14 = arith.muli %c1_i32, %c8_i32_6 : i32
    %15 = tpu.assume_multiple %14, 8 : i32
    %16 = arith.index_cast %15 : i32 to index
    %c0_7 = arith.constant 0 : index
    %c0_8 = arith.constant 0 : index
    %17 = vector.load %arg2[%16, %c0_7, %c0_8] : memref<16x8x128xf32, #tpu.memory_space<vmem>>, vector<8x8x128xf32>
    %18 = arith.index_cast %15 : i32 to index
    %c0_9 = arith.constant 0 : index
    %c0_10 = arith.constant 0 : index
    %19 = vector.load %arg3[%18, %c0_9, %c0_10] : memref<16x8x128xf32, #tpu.memory_space<vmem>>, vector<8x8x128xf32>
    %20 = arith.subf %17, %19 : vector<8x8x128xf32>
    %21 = arith.mulf %20, %20 : vector<8x8x128xf32>
    %cst_11 = arith.constant dense<0.000000e+00> : vector<8x128xf32>
    %22 = vector.multi_reduction <add>, %21, %cst_11 [0] : vector<8x8x128xf32> to vector<8x128xf32>
    %23 = arith.addf %13, %22 : vector<8x128xf32>
    %c2_i32 = arith.constant 2 : i32
    %c0_12 = arith.constant 0 : index
    %c0_13 = arith.constant 0 : index
    %c0_14 = arith.constant 0 : index
    %24 = vector.load %arg4[%c0_12, %c0_13, %c0_14] : memref<1x8x128xf32, #tpu.memory_space<vmem>>, vector<1x8x128xf32>
    %25 = vector.shape_cast %24 : vector<1x8x128xf32> to vector<8x128xf32>
    %26 = arith.addf %25, %23 : vector<8x128xf32>
    %c0_15 = arith.constant 0 : index
    %c0_16 = arith.constant 0 : index
    %c0_17 = arith.constant 0 : index
    %27 = vector.load %arg4[%c0_15, %c0_16, %c0_17] : memref<1x8x128xf32, #tpu.memory_space<vmem>>, vector<1x8x128xf32>
    %28 = vector.shape_cast %27 : vector<1x8x128xf32> to vector<8x128xf32>
    %29 = vector.shape_cast %26 : vector<8x128xf32> to vector<1x8x128xf32>
    tpu.vector_store %arg4[%c0_15, %c0_16, %c0_17], %29 {strides = array<i32>} : memref<1x8x128xf32, #tpu.memory_space<vmem>>, vector<1x8x128xf32>,
    return
  }
  func.func @transform_0(%arg0: i32, %arg1: i32) -> (i32, i32, i32) {
    %c1_i32 = arith.constant 1 : i32
    %0 = arith.muli %arg0, %c1_i32 : i32
    %1 = arith.addi %0, %arg1 : i32
    %c0_i32 = arith.constant 0 : i32
    %c0_i32_0 = arith.constant 0 : i32
    %c0_i32_1 = arith.constant 0 : i32
    return %1, %c0_i32, %c0_i32_0 : i32, i32, i32
  }
  func.func @transform_1(%arg0: i32, %arg1: i32) -> (i32, i32, i32) {
    %c1_i32 = arith.constant 1 : i32
    %0 = arith.muli %arg0, %c1_i32 : i32
    %1 = arith.addi %0, %arg1 : i32
    %c0_i32 = arith.constant 0 : i32
    %c0_i32_0 = arith.constant 0 : i32
    %c0_i32_1 = arith.constant 0 : i32
    return %1, %c0_i32, %c0_i32_0 : i32, i32, i32
  }
  func.func @transform_2(%arg0: i32, %arg1: i32) -> (i32, i32, i32) {
    %c0_i32 = arith.constant 0 : i32
    %c0_i32_0 = arith.constant 0 : i32
    %c0_i32_1 = arith.constant 0 : i32
    return %arg0, %c0_i32, %c0_i32_0 : i32, i32, i32
  }
}

</mosaic_0001>

<bundles_post_ra>
// kernel: weighted_mse_dit.1
= control target key start
LH: loop header
LB: loop body
LE: loop exit
PB: predicated region body
PF: predicated region fallthrough
CT: control target
= control target key end

     0   :  { %s298_s0 = inlined_call_operand.vmem [shape: f32[16,8,128], index: 0, kind: input, shape index: {}]   ;;  %s299_s1 = inlined_call_operand.vmem [shape: f32[16,8,128], index: 1, kind: input, shape index: {}]   ;;  %s300_s2 = inlined_call_operand.vmem [shape: f32[1,8,128], index: 2, kind: output, shape index: {}]  }
   0x1   :  { %v62_v0 = vld [vmem:[%s298_s0] sm:$0xff]  ;;  %v63_v1 = vld [vmem:[%s298_s0 + $0x8] sm:$0xff]  ;;  %v64_v2 = vld [vmem:[%s298_s0 + $0x10] sm:$0xff] }
   0x2   :  { %v65_v3 = vld [vmem:[%s298_s0 + $0x18] sm:$0xff]  ;;  %v66_v4 = vld [vmem:[%s298_s0 + $0x20] sm:$0xff]  ;;  %v72_v6 = vld [vmem:[%s299_s1 + $0x8] sm:$0xff] }
   0x3   :  { %v71_v5 = vld [vmem:[%s299_s1] sm:$0xff]  ;;  %v73_v7 = vld [vmem:[%s299_s1 + $0x10] sm:$0xff]  ;;  %v74_v8 = vld [vmem:[%s299_s1 + $0x18] sm:$0xff]  ;;  %v80_v11 = vsub.f32 %v63_v1, %v72_v6 }
   0x4   :  { %v79_v9 = vsub.f32 %v62_v0, %v71_v5  ;;  %v75_v10 = vld [vmem:[%s299_s1 + $0x20] sm:$0xff]  ;;  %v81_v12 = vsub.f32 %v64_v2, %v73_v7  ;;  %v82_v13 = vsub.f32 %v65_v3, %v74_v8  ;;  %v67_v14 = vld [vmem:[%s298_s0 + $0x28] sm:$0xff]  ;;  %v68_v17 = vld [vmem:[%s298_s0 + $0x30] sm:$0xff] }
   0x5   :  { %v76_v15 = vld [vmem:[%s299_s1 + $0x28] sm:$0xff]  ;;  %v83_v18 = vsub.f32 %v66_v4, %v75_v10  ;;  %v88_v19 = vmul.f32 %v80_v11, %v80_v11  ;;  %v167_v21 = vld [vmem:[%s298_s0 + $0x40] sm:$0xff]  ;;  %v169_v23 = vld [vmem:[%s298_s0 + $0x50] sm:$0xff] }
   0x6   :  { %v87_v16 = vmul.f32 %v79_v9, %v79_v9  ;;  %v89_v20 = vmul.f32 %v81_v12, %v81_v12  ;;  %v168_v22 = vld [vmem:[%s298_s0 + $0x48] sm:$0xff]  ;;  %v77_v24 = vld [vmem:[%s299_s1 + $0x30] sm:$0xff]  ;;  %v170_v25 = vld [vmem:[%s298_s0 + $0x58] sm:$0xff]  ;;  %v84_v27 = vsub.f32 %v67_v14, %v76_v15  ;;  %v90_v28 = vmul.f32 %v82_v13, %v82_v13 }
   0x7   :  { %v171_v26 = vld [vmem:[%s298_s0 + $0x60] sm:$0xff]  ;;  %v176_v31 = vld [vmem:[%s299_s1 + $0x48] sm:$0xff]  ;;  %v177_v32 = vld [vmem:[%s299_s1 + $0x50] sm:$0xff]  ;;  %v91_v38 = vmul.f32 %v83_v18, %v83_v18  ;;  %v85_v45 = vsub.f32 %v68_v17, %v77_v24 }
   0x8   :  { %v95_v29 = vadd.f32 %v88_v19, %v87_v16  ;;  %v175_v30 = vld [vmem:[%s299_s1 + $0x40] sm:$0xff]  ;;  %v178_v33 = vld [vmem:[%s299_s1 + $0x58] sm:$0xff]  ;;  %v123_v36 = vsub.f32 %v168_v22, %v176_v31  ;;  %v124_v37 = vsub.f32 %v169_v23, %v177_v32  ;;  %v172_v40 = vld [vmem:[%s298_s0 + $0x68] sm:$0xff]  ;;  %v92_v49 = vmul.f32 %v84_v27, %v84_v27 }
   0x9   :  { %v179_v34 = vld [vmem:[%s299_s1 + $0x60] sm:$0xff]  ;;  %v122_v35 = vsub.f32 %v167_v21, %v175_v30  ;;  %v180_v41 = vld [vmem:[%s299_s1 + $0x68] sm:$0xff]  ;;  %v125_v42 = vsub.f32 %v170_v25, %v178_v33  ;;  %v69_v43 = vld [vmem:[%s298_s0 + $0x38] sm:$0xff]  ;;  %v93_v61 = vmul.f32 %v85_v45, %v85_v45 }
   0xa   :  { %v96_v39 = vadd.f32 %v95_v29, %v89_v20  ;;  %v78_v44 = vld [vmem:[%s299_s1 + $0x38] sm:$0xff]  ;;  %v126_v46 = vsub.f32 %v171_v26, %v179_v34  ;;  %v131_v48 = vmul.f32 %v123_v36, %v123_v36  ;;  %v173_v51 = vld [vmem:[%s298_s0 + $0x70] sm:$0xff]  ;;  %v132_v53 = vmul.f32 %v124_v37, %v124_v37 }
   0xb   :  { %v130_v47 = vmul.f32 %v122_v35, %v122_v35  ;;  %v181_v52 = vld [vmem:[%s299_s1 + $0x70] sm:$0xff]  ;;  %v127_v54 = vsub.f32 %v172_v40, %v180_v41  ;;  %v133_v55 = vmul.f32 %v125_v42, %v125_v42  ;;  %v86_v57 = vsub.f32 %v69_v43, %v78_v44  ;;  %v174_v59 = vld [vmem:[%s298_s0 + $0x78] sm:$0xff] }
   0xc   :  { %v97_v50 = vadd.f32 %v96_v39, %v90_v28  ;;  %v182_v60 = vld [vmem:[%s299_s1 + $0x78] sm:$0xff]  ;;  %v128_v62 = vsub.f32 %v173_v51, %v181_v52  ;;  %v134_v63 = vmul.f32 %v126_v46, %v126_v46 }
   0xd   :  { %v138_v56 = vadd.f32 %v131_v48, %v130_v47  ;;  %v129_v2 = vsub.f32 %v174_v59, %v182_v60  ;;  %v135_v3 = vmul.f32 %v127_v54, %v127_v54  ;;  %v94_v5 = vmul.f32 %v86_v57, %v86_v57 }
   0xe   :  { %v98_v58 = vadd.f32 %v97_v50, %v91_v38  ;;  %v136_v7 = vmul.f32 %v128_v62, %v128_v62 }
   0xf   :  { %v139_v0 = vadd.f32 %v138_v56, %v132_v53  ;;  %v137_v9 = vmul.f32 %v129_v2, %v129_v2 }
  0x10   :  { %v99_v1 = vadd.f32 %v98_v58, %v92_v49 }
  0x11   :  { %v140_v4 = vadd.f32 %v139_v0, %v133_v55 }
  0x12   :  { %v100_v6 = vadd.f32 %v99_v1, %v93_v61 }
  0x13   :  { %v141_v8 = vadd.f32 %v140_v4, %v134_v63 }
  0x14   :  { %v101_v11 = vadd.f32 %v100_v6, %v94_v5 }
  0x15   :  { %v142_v10 = vadd.f32 %v141_v8, %v135_v3 }
  0x17   :  { %v143_v12 = vadd.f32 %v142_v10, %v136_v7 }
  0x19   :  { %v144_v13 = vadd.f32 %v143_v12, %v137_v9 }
  0x1b   :  { %v145_v14 = vadd.f32 %v144_v13, %v101_v11 }
  0x1d   :  { %148 = vst [vmem:[%s300_s2] sm:$0xff] %v145_v14 }

</bundles_post_ra>
